<compile_context>
chip_gen: v7x
topology: tpu7x:2x2x1
jax: 0.10.0
libtpu: 0.0.40
codegen_flags: <defaults>
</compile_context>

<pallas_src>
import functools

import jax
import jax.numpy as jnp
from jax import lax
from jax.experimental import pallas as pl
from jax.experimental.pallas import tpu as pltpu

_LANES = 128
_SUBLANE_PACK = 16   # safe row granularity for both f32 (8) and bf16 (16)


def _round_up(x: int, m: int) -> int:
    return ((x + m - 1) // m) * m


def _pair_sce_kernel(x_ref, o_ref, acc_ref, *, target: int, n: int,
                     tile_rows: int):
    """One grid step over a (2, tile_rows, 128) tile of stacked predictions.

    x_ref   : VMEM (2, tile_rows, 128)  -- x[0] = pred1 tile, x[1] = pred2 tile
    o_ref   : SMEM (1, 1) f32           -- final mean loss (written at last step)
    acc_ref : VMEM (8, 128) f32         -- running elementwise partial sums
    """
    i = pl.program_id(0)

    @pl.when(i == 0)
    def _init():
        acc_ref[...] = jnp.zeros_like(acc_ref)

    p1 = x_ref[0].astype(jnp.float32)                      # (tile_rows, 128)
    p2 = x_ref[1].astype(jnp.float32)

    # 2-class cross entropy == softplus of the "other minus chosen" margin:
    #   loss_i = log(exp(p1)+exp(p2)) - p_chosen = log(1 + exp(p_other - p_chosen))
    d = (p2 - p1) if target == 0 else (p1 - p2)            # other - chosen
    # Numerically stable softplus: 1 exp + 1 log per element (EUP), rest VPU.
    loss = jnp.maximum(d, 0.0) + jnp.log(1.0 + jnp.exp(-jnp.abs(d)))

    # Mask out padded tail elements (flat index >= true N).
    row = lax.broadcasted_iota(jnp.int32, (tile_rows, _LANES), 0)
    lane = lax.broadcasted_iota(jnp.int32, (tile_rows, _LANES), 1)
    flat_idx = (i * tile_rows + row) * _LANES + lane
    loss = jnp.where(flat_idx < n, loss, 0.0)

    # Elementwise (VPU-only) accumulation into an (8, 128) vreg: the reshape
    # keeps native (8,128) tiles intact, so the axis-0 sum is plain vreg adds.
    acc_ref[...] += loss.reshape(tile_rows // 8, 8, _LANES).sum(axis=0)

    @pl.when(i == pl.num_programs(0) - 1)
    def _finalize():
        # Single cross-lane/sublane (XLU) reduction + single scale by 1/N.
        o_ref[0, 0] = jnp.sum(acc_ref[...]) * jnp.float32(1.0 / n)


def pair_sce_loss(pred1: jax.Array, pred2: jax.Array, sign: int = 1,
                  *, max_tile_rows: int = 2048) -> jax.Array:
    """Pallas equivalent of PairSCELoss.forward(pred1, pred2, sign).

    pred1, pred2 : shape [N] prediction scores (f32 or bf16; bf16 halves HBM
                   traffic, upcast to f32 happens in-kernel).
    sign         : static python int, 1 or -1.
    Returns scalar float32 mean loss.
    """
    assert pred1.shape == pred2.shape and pred1.ndim == 1
    n = pred1.shape[0]
    target = int((1 - sign) // 2)            # 0 if sign=1, 1 if sign=-1

    max_tile_rows = max(_SUBLANE_PACK,
                        (max_tile_rows // _SUBLANE_PACK) * _SUBLANE_PACK)
    rows = pl.cdiv(n, _LANES)
    tile_rows = min(max_tile_rows, _round_up(rows, _SUBLANE_PACK))
    padded_rows = _round_up(rows, tile_rows)
    pad = padded_rows * _LANES - n

    p1 = jnp.pad(pred1, (0, pad)).reshape(padded_rows, _LANES)
    p2 = jnp.pad(pred2, (0, pad)).reshape(padded_rows, _LANES)
    stacked = jnp.stack([p1, p2], axis=0)    # (2, padded_rows, 128), input dtype

    grid = (padded_rows // tile_rows,)

    out = pl.pallas_call(
        functools.partial(_pair_sce_kernel, target=target, n=n,
                          tile_rows=tile_rows),
        out_shape=jax.ShapeDtypeStruct((1, 1), jnp.float32),
        grid_spec=pltpu.PrefetchScalarGridSpec(
            num_scalar_prefetch=0,
            grid=grid,
            in_specs=[pl.BlockSpec((2, tile_rows, _LANES),
                                   lambda i: (0, i, 0))],
            out_specs=pl.BlockSpec((1, 1), lambda i: (0, 0),
                                   memory_space=pltpu.MemorySpace.SMEM),
            scratch_shapes=[pltpu.VMEM((8, _LANES), jnp.float32)],
        ),
        compiler_params=pltpu.CompilerParams(
            dimension_semantics=("arbitrary",)),
    )(stacked)
    return out[0, 0]


def _reference_loss(pred1, pred2, sign=1):
    """Pure-JAX reference matching torch CrossEntropyLoss semantics."""
    logits = jnp.stack([pred1, pred2], axis=1).astype(jnp.float32)   # [N, 2]
    target = int((1 - sign) // 2)
    logp = jax.nn.log_softmax(logits, axis=1)
    return -jnp.mean(logp[:, target])


if __name__ == "__main__":
    key = jax.random.PRNGKey(0)
    k1, k2 = jax.random.split(key)

    N = 256  # small batch of pairwise predictions
    pred1 = jax.random.normal(k1, (N,), dtype=jnp.float32)
    pred2 = jax.random.normal(k2, (N,), dtype=jnp.float32)

    # sign = 1 path (pred1 should be greater than pred2)
    loss = jax.block_until_ready(pair_sce_loss(pred1, pred2, sign=1))
    ref = _reference_loss(pred1, pred2, sign=1)
    assert jnp.allclose(loss, ref, rtol=1e-4, atol=1e-4), (loss, ref)

    # sign = -1 path
    loss_neg = jax.block_until_ready(pair_sce_loss(pred1, pred2, sign=-1))
    ref_neg = _reference_loss(pred1, pred2, sign=-1)
    assert jnp.allclose(loss_neg, ref_neg, rtol=1e-4, atol=1e-4), (loss_neg, ref_neg)

    # Multi-step grid + tail masking (N not a multiple of 128, several tiles).
    N2 = 5000
    q1 = jax.random.normal(jax.random.PRNGKey(1), (N2,), dtype=jnp.float32)
    q2 = jax.random.normal(jax.random.PRNGKey(2), (N2,), dtype=jnp.float32)
    loss2 = jax.block_until_ready(pair_sce_loss(q1, q2, sign=1, max_tile_rows=16))
    ref2 = _reference_loss(q1, q2, sign=1)
    assert jnp.allclose(loss2, ref2, rtol=1e-4, atol=1e-4), (loss2, ref2)

    # bf16 inputs: half the HBM bytes, upcast to f32 in-kernel.
    b1 = pred1.astype(jnp.bfloat16)
    b2 = pred2.astype(jnp.bfloat16)
    loss_bf16 = jax.block_until_ready(pair_sce_loss(b1, b2, sign=1))
    ref_bf16 = _reference_loss(b1, b2, sign=1)
    assert jnp.allclose(loss_bf16, ref_bf16, rtol=1e-3, atol=1e-3), (loss_bf16, ref_bf16)

    print("KERNEL_OK")
</pallas_src>

<mosaic_0001>
module attributes {stable_mosaic.version = 11 : i64} {
  func.func @_pair_sce_kernel(%arg0: i32, %arg1: memref<2x16x128xf32, #tpu.memory_space<vmem>>, %arg2: memref<1x1xf32, #tpu.memory_space<smem>>, %arg3: memref<8x128xf32, #tpu.memory_space<vmem>>) attributes {dimension_semantics = [#tpu.dimension_semantics<arbitrary>], iteration_bounds = array<i64: 1>, scalar_prefetch = 0 : i64, scratch_operands = 1 : i64, tpu.core_type = #tpu.core_type<tc>, window_params = [{transform_indices = @transform_0, window_bounds = array<i64: 2, 16, 128>}, {transform_indices = @transform_1, window_bounds = array<i64: 1, 1>}]} {
    %c0_i32 = arith.constant 0 : i32
    %0 = arith.cmpi eq, %arg0, %c0_i32 : i32
    %1 = arith.extui %0 : i1 to i32
    %c0_i32_0 = arith.constant 0 : i32
    %2 = arith.cmpi ne, %1, %c0_i32_0 : i32
    scf.if %2 {
      %cst_15 = arith.constant 0.000000e+00 : f32
      %38 = vector.broadcast %cst_15 : f32 to vector<8x128xf32>
      %c0_16 = arith.constant 0 : index
      %c0_17 = arith.constant 0 : index
      %39 = vector.load %arg3[%c0_16, %c0_17] : memref<8x128xf32, #tpu.memory_space<vmem>>, vector<8x128xf32>
      tpu.vector_store %arg3[%c0_16, %c0_17], %38 {strides = array<i32>} : memref<8x128xf32, #tpu.memory_space<vmem>>, vector<8x128xf32>,
    } else {
    }
    %c0 = arith.constant 0 : index
    %c0_1 = arith.constant 0 : index
    %c0_2 = arith.constant 0 : index
    %3 = vector.load %arg1[%c0, %c0_1, %c0_2] : memref<2x16x128xf32, #tpu.memory_space<vmem>>, vector<1x16x128xf32>
    %4 = vector.shape_cast %3 : vector<1x16x128xf32> to vector<16x128xf32>
    %c1 = arith.constant 1 : index
    %c0_3 = arith.constant 0 : index
    %c0_4 = arith.constant 0 : index
    %5 = vector.load %arg1[%c1, %c0_3, %c0_4] : memref<2x16x128xf32, #tpu.memory_space<vmem>>, vector<1x16x128xf32>
    %6 = vector.shape_cast %5 : vector<1x16x128xf32> to vector<16x128xf32>
    %7 = arith.subf %6, %4 : vector<16x128xf32>
    %cst = arith.constant 0.000000e+00 : f32
    %8 = vector.broadcast %cst : f32 to vector<16x128xf32>
    %9 = arith.maximumf %7, %8 : vector<16x128xf32>
    %10 = math.absf %7 : vector<16x128xf32>
    %cst_5 = arith.constant 0.000000e+00 : f32
    %11 = vector.broadcast %cst_5 : f32 to vector<16x128xf32>
    %12 = arith.subf %11, %10 : vector<16x128xf32>
    %13 = math.exp %12 : vector<16x128xf32>
    %cst_6 = arith.constant 1.000000e+00 : f32
    %14 = vector.broadcast %cst_6 : f32 to vector<16x128xf32>
    %15 = arith.addf %14, %13 : vector<16x128xf32>
    %16 = math.log %15 : vector<16x128xf32>
    %17 = arith.addf %9, %16 : vector<16x128xf32>
    %18 = tpu.iota {dimensions = array<i32: 0>} : vector<16x128xi32>
    %19 = tpu.iota {dimensions = array<i32: 1>} : vector<16x128xi32>
    %c16_i32 = arith.constant 16 : i32
    %20 = arith.muli %arg0, %c16_i32 : i32
    %21 = vector.broadcast %20 : i32 to vector<16x128xi32>
    %22 = arith.addi %21, %18 : vector<16x128xi32>
    %c128_i32 = arith.constant 128 : i32
    %23 = vector.broadcast %c128_i32 : i32 to vector<16x128xi32>
    %24 = arith.muli %22, %23 : vector<16x128xi32>
    %25 = arith.addi %24, %19 : vector<16x128xi32>
    %c256_i32 = arith.constant 256 : i32
    %26 = vector.broadcast %c256_i32 : i32 to vector<16x128xi32>
    %27 = arith.cmpi slt, %25, %26 : vector<16x128xi32>
    %cst_7 = arith.constant 0.000000e+00 : f32
    %28 = vector.broadcast %cst_7 : f32 to vector<16x128xf32>
    %29 = arith.select %27, %17, %28 : vector<16x128xi1>, vector<16x128xf32>
    %c0_8 = arith.constant 0 : index
    %c0_9 = arith.constant 0 : index
    %30 = vector.load %arg3[%c0_8, %c0_9] : memref<8x128xf32, #tpu.memory_space<vmem>>, vector<8x128xf32>
    %31 = vector.shape_cast %29 : vector<16x128xf32> to vector<2x8x128xf32>
    %cst_10 = arith.constant dense<0.000000e+00> : vector<8x128xf32>
    %32 = vector.multi_reduction <add>, %31, %cst_10 [0] : vector<2x8x128xf32> to vector<8x128xf32>
    %33 = arith.addf %30, %32 : vector<8x128xf32>
    %c0_11 = arith.constant 0 : index
    %c0_12 = arith.constant 0 : index
    %34 = vector.load %arg3[%c0_11, %c0_12] : memref<8x128xf32, #tpu.memory_space<vmem>>, vector<8x128xf32>
    tpu.vector_store %arg3[%c0_11, %c0_12], %33 {strides = array<i32>} : memref<8x128xf32, #tpu.memory_space<vmem>>, vector<8x128xf32>,
    %c0_i32_13 = arith.constant 0 : i32
    %35 = arith.cmpi eq, %arg0, %c0_i32_13 : i32
    %36 = arith.extui %35 : i1 to i32
    %c0_i32_14 = arith.constant 0 : i32
    %37 = arith.cmpi ne, %36, %c0_i32_14 : i32
    scf.if %37 {
      %c0_15 = arith.constant 0 : index
      %c0_16 = arith.constant 0 : index
      %38 = vector.load %arg3[%c0_15, %c0_16] : memref<8x128xf32, #tpu.memory_space<vmem>>, vector<8x128xf32>
      %39 = vector.shape_cast %38 : vector<8x128xf32> to vector<1x8x128xf32>
      %cst_17 = arith.constant dense<0.000000e+00> : vector<1xf32>
      %40 = vector.multi_reduction <add>, %39, %cst_17 [1, 2] : vector<1x8x128xf32> to vector<1xf32>
      %41 = vector.shape_cast %40 : vector<1xf32> to vector<1x1x1xf32>
      %42 = vector.extract %41[0, 0, 0] : f32 from vector<1x1x1xf32>
      %cst_18 = arith.constant 3.906250e-03 : f32
      %43 = arith.mulf %42, %cst_18 : f32
      %c0_19 = arith.constant 0 : index
      %c0_20 = arith.constant 0 : index
      %44 = memref.load %arg2[%c0_19, %c0_20] : memref<1x1xf32, #tpu.memory_space<smem>>
      memref.store %43, %arg2[%c0_19, %c0_20] : memref<1x1xf32, #tpu.memory_space<smem>>
    } else {
    }
    return
  }
  func.func @transform_0(%arg0: i32) -> (i32, i32, i32) {
    %c0_i32 = arith.constant 0 : i32
    %c0_i32_0 = arith.constant 0 : i32
    %c0_i32_1 = arith.constant 0 : i32
    return %c0_i32, %arg0, %c0_i32_0 : i32, i32, i32
  }
  func.func @transform_1(%arg0: i32) -> (i32, i32) {
    %c0_i32 = arith.constant 0 : i32
    %c0_i32_0 = arith.constant 0 : i32
    %c0_i32_1 = arith.constant 0 : i32
    return %c0_i32, %c0_i32_0 : i32, i32
  }
}

</mosaic_0001>

<bundles_post_ra>
// kernel: tpu_custom_call.1
= control target key start
LH: loop header
LB: loop body
LE: loop exit
PB: predicated region body
PF: predicated region fallthrough
CT: control target
= control target key end

     0   :  { %6 = vsyncpa [#allocation4], 0  ;;  %s192_s0 = inlined_call_operand.hbm [shape: f32[2,16,128], index: 0, kind: input, shape index: {}]   ;;  %s193_s1 = inlined_call_operand.hbm [shape: f32[1,1], index: 1, kind: output, shape index: {}]  }
   0x1   :  { %7 = vsyncpa [#allocation5], 0  ;;  %s154_s6 = smov [#allocation3]   ;;  %s118_s10 = scalar_lea.hbm %s192_s0, 512 }
   0x2   :  { %s13_s7 = sshll.u32 %s154_s6, 4  ;;  %p119_p0 = scmp.ne.s32.totalorder %s192_s0, %s118_s10  ;;  %s14_s7 = int_to_ptr.vmem [resolvable:$true] %s13_s7 }
   0x3   :  { %p122_p1 = scmp.lt.u32.totalorder %s118_s10, %s192_s0 }
   0x5   :  { %p124_p2 = pnand %p122_p1, %p119_p0 }
   0x7   :  { %127 = shalt.err (!%p124_p2)
}
   0x8   :  { %s128_s15 = scalar_lea.vmem %s14_s7, 512  ;;  %p133_p4 = scmp.lt.s32.totalorder %s14_s7, %s14_s7 }
   0x9   :  { %p129_p3 = scmp.ne.s32.totalorder %s14_s7, %s128_s15  ;;  %p134_p5 = scmp.lt.s32.totalorder %s128_s15, %s128_s15 }
   0xb   :  { %p135_p6 = por %p134_p5, %p133_p4 }
   0xd   :  { %p136_p7 = pnand %p135_p6, %p129_p3 }
   0xf   :  { %139 = shalt.err (!%p136_p7)
}
  0x10   :  { %s155_s16 = smov 128   ;;  %s156_s17 = smov 8  }
  0x11   :  { %19 = dma.hbm_to_vmem [thread:$0]  %s192_s0, 512, %s14_s7, [#allocation4], %s155_s16, %s155_s16, %s156_s17  }
  0x12   :  { %150 = dma.done.wait [#allocation4], 512  }
  0x13   :  { %151 = vsyncadd [#allocation4], 4294966784  ;;  %v28_v0 = vld [vmem:[#allocation3] sm:$0xff]  ;;  %v29_v1 = vld [vmem:[#allocation3 + $0x8] sm:$0xff]  ;;  %v53_v12 = vlaneseq  ;;  %s140_s23 = scalar_lea.hbm %s193_s1, 16 }
  0x14   :  { %v31_v2 = vld [vmem:[#allocation3 + $0x10] sm:$0xff]  ;;  %v32_v3 = vld [vmem:[#allocation3 + $0x18] sm:$0xff]  ;;  %p141_p8 = scmp.ne.s32.totalorder %s193_s1, %s140_s23  ;;  %p144_p9 = scmp.lt.u32.totalorder %s140_s23, %s193_s1 }
  0x15   :  { %v33_v4 = vsub.f32 %v31_v2, %v28_v0  ;;  %v34_v5 = vsub.f32 %v32_v3, %v29_v1  ;;  %v54_v14 = vshrl.u32 %v53_v12, 7  ;;  %v57_v19 = vand.u32 127, %v53_v12 }
  0x16   :  { %p146_p10 = pnand %p144_p9, %p141_p8 }
  0x17   :  { %v37_v6 = vand.u32 2147483647, %v33_v4  ;;  %v38_v7 = vand.u32 2147483647, %v34_v5  ;;  %v55_v18 = vadd.s32 8, %v54_v14  ;;  %v62_v20 = vmul.u32 128, %v54_v14 }
  0x18   :  { %v35_v23 = vmax.f32 %v33_v4, 0.0  ;;  %v36_v26 = vmax.f32 %v34_v5, 0.0 }
  0x19   :  { %v39_v8 = vsub.f32 0.0, %v37_v6  ;;  %v40_v9 = vsub.f32 0.0, %v38_v7  ;;  %v63_v21 = vmul.u32 128, %v55_v18  ;;  %v64_v22 = vadd.s32 %v62_v20, %v57_v19 }
  0x1b   :  { %v41_v10 = vmul.f32 1.442695, %v39_v8  ;;  %v43_v11 = vmul.f32 1.442695, %v40_v9  ;;  %v65_v24 = vadd.s32 %v63_v21, %v57_v19  ;;  %vm66_vm0 = vcmp.lt.s32.totalorder %v64_v22, 256 }
  0x1d   :  { %110 = vpow2.f32 %v41_v10  ;;  %vm67_vm1 = vcmp.lt.s32.totalorder %v65_v24, 256 }
  0x1e   :  { %112 = vpow2.f32 %v43_v11 }
  0x27   :  { %v111_v13 = vpop.eup %110 }
  0x28   :  { %v113_v15 = vpop.eup %112  ;;  %v45_v16 = vadd.f32 1.0, %v111_v13 }
  0x29   :  { %v46_v17 = vadd.f32 1.0, %v113_v15 }
  0x2a   :  { %114 = vlog2.f32 %v45_v16 }
  0x2b   :  { %116 = vlog2.f32 %v46_v17 }
  0x34   :  { %v115_v25 = vpop.eup %114 }
  0x35   :  { %v117_v27 = vpop.eup %116  ;;  %v48_v28 = vmul.f32 0.6931472, %v115_v25 }
  0x36   :  { %v50_v29 = vmul.f32 0.6931472, %v117_v27 }
  0x37   :  { %v51_v30 = vadd.f32 %v48_v28, %v35_v23 }
  0x38   :  { %v52_v31 = vadd.f32 %v50_v29, %v36_v26 }
  0x39   :  { %v68_v32 = vsel %vm66_vm0, %v51_v30, 0.0 }
  0x3a   :  { %v69_v33 = vsel %vm67_vm1, %v52_v31, 0.0 }
  0x3b   :  { %v71_v34 = vadd.f32 %v69_v33, %v68_v32 }
  0x3d   :  { %78 = vadd.xlane.f32.xlu0 %v71_v34 }
  0xca   :  { %v79_v35 = vpop.xlane.xlu0 %78 }
  0xcb   :  { %v80_v36 = vrot.slane %v79_v35, 4 }
  0xcd   :  { %v81_v37 = vadd.f32 %v80_v36, %v79_v35 }
  0xcf   :  { %v82_v38 = vrot.slane %v81_v37, 2 }
  0xd1   :  { %v83_v39 = vadd.f32 %v82_v38, %v81_v37 }
  0xd3   :  { %v84_v40 = vrot.slane %v83_v39, 1 }
  0xd5   :  { %v85_v41 = vadd.f32 %v84_v40, %v83_v39 }
  0xd7   :  { %104 = vpush %v85_v41 }
 0x108   :  { %s105_s0 = spop %104 }
 0x109   :  { %s87_s20 = smul.f32 0.00390625, %s105_s0 }
 0x10b   :  { %89 = sst [smem:[#allocation6]] %s87_s20 }
 0x10c   :  { %149 = shalt.err (!%p146_p10)
}
 0x10d   :  { %s157_s28 = smov [#allocation6]  }
 0x10e   :  { %97 = dma.smem_to_hbm %s157_s28, 16, %s193_s1, [#allocation5]  }
 0x10f   :  { %152 = dma.done.wait [#allocation5], 16  }
 0x110   :  { %153 = vsyncadd [#allocation5], 4294967280 }
 0x111   :  { %101 = sfence }
 0x112   :  { %102 = vsyncpa [#allocation4], 1 }
 0x113   :  { %103 = vsyncpa [#allocation5], 1 }

</bundles_post_ra>
